<compile_context>
chip_gen: v7x
topology: tpu7x:2x2x1
jax: 0.10.0
libtpu: 0.0.40
codegen_flags: <defaults>
</compile_context>

<pallas_src>
import jax
import jax.numpy as jnp
import numpy as np
from jax.experimental import pallas as pl
from jax.experimental.pallas import tpu as pltpu


def conv_pool_kernel(w_ref, b_ref, x_ref, o_ref):
    # w_ref : (C_OUT*9,)        f32 SMEM  conv weights, PyTorch (c, i, j) order
    # b_ref : (C_OUT,)          f32 SMEM  conv bias
    # x_ref : (1, 4, Hh, Wh)    f32 VMEM  parity planes of one image:
    #                                     plane 2*u+v holds x[2p+u, 2q+v]
    # o_ref : (1, HP, C_OUT*WP) f32 VMEM  pooled output, channels along lanes
    c_out = b_ref.shape[0]
    _, hp, cw = o_ref.shape
    wp = cw // c_out

    # Load the 4 parity planes once; everything below is contiguous slices
    # plus VPU multiply/add/max — the MXU is never touched.
    plane = [[x_ref[0, 2 * u + v] for v in range(2)] for u in range(2)]

    for c in range(c_out):                       # C_OUT = 2, unrolled at trace time
        pooled = None
        # Conv-output phase (a, b) covers positions (2p+a, 2q+b); the 2x2
        # stride-2 max pool is exactly the max over the 4 phases.
        for a in range(2):
            for b in range(2):
                acc = jnp.zeros((hp, wp), jnp.float32)
                for i in range(3):
                    for j in range(3):
                        u, di = (a + i) % 2, (a + i) // 2
                        v, dj = (b + j) % 2, (b + j) // 2
                        win = plane[u][v][di:di + hp, dj:dj + wp]
                        acc = acc + w_ref[c * 9 + i * 3 + j] * win
                pooled = acc if pooled is None else jnp.maximum(pooled, acc)
        # Bias is phase-independent: add once after the max.
        o_ref[0, :, c * wp:(c + 1) * wp] = (pooled + b_ref[c]).astype(o_ref.dtype)


def net_forward(x_nchw, w, b):
    """x_nchw: (N, 1, H, W) f32; w: (C_OUT, 3, 3) f32; b: (C_OUT,) f32."""
    N, c_in, H, W = x_nchw.shape
    assert c_in == 1, "Net.conv1 has a single input channel"
    assert H >= 4 and W >= 4, "need conv output >= 2x2 for the 2x2 max pool"
    c_out = w.shape[0]
    HP, WP = (H - 2) // 2, (W - 2) // 2          # PyTorch floor pooling semantics

    # Conv + floor pool never touches a trailing odd row/col -> truncate so the
    # parity planes are rectangular (pure layout plumbing, semantics unchanged).
    He, We = 2 * HP + 2, 2 * WP + 2
    x = x_nchw[:, 0, :He, :We]                   # (N, He, We)
    Hh, Wh = He // 2, We // 2                    # = HP + 1, WP + 1

    # 4 parity planes per image, plane 2*u+v = x[2p+u, 2q+v] -> (N, 4, Hh, Wh).
    xph = jnp.stack([x[:, 0::2, 0::2], x[:, 0::2, 1::2],
                     x[:, 1::2, 0::2], x[:, 1::2, 1::2]], axis=1)

    out = pl.pallas_call(
        conv_pool_kernel,
        out_shape=jax.ShapeDtypeStruct((N, HP, c_out * WP), jnp.float32),
        grid=(N,),                               # one image per step
        in_specs=[
            pl.BlockSpec(memory_space=pltpu.MemorySpace.SMEM),     # w (flat)
            pl.BlockSpec(memory_space=pltpu.MemorySpace.SMEM),     # b
            pl.BlockSpec((1, 4, Hh, Wh), lambda n: (n, 0, 0, 0)),  # parity planes
        ],
        out_specs=pl.BlockSpec((1, HP, c_out * WP), lambda n: (n, 0, 0)),
        compiler_params=pltpu.CompilerParams(
            dimension_semantics=("parallel",)),  # batch images are independent
    )(w.reshape(c_out * 9), b, xph)

    # (N, HP, C_OUT*WP) -> NCHW.
    return out.reshape(N, HP, c_out, WP).transpose(0, 2, 1, 3)


if __name__ == "__main__":
    key = jax.random.PRNGKey(0)
    kx, kw, kb = jax.random.split(key, 3)

    N, H, W = 2, 16, 16
    C_OUT = 2
    x = jax.random.normal(kx, (N, 1, H, W), dtype=jnp.float32)
    # Deterministic synthetic parameters (same shapes as nn.Conv2d(1, 2, 3)).
    w = jax.random.normal(kw, (C_OUT, 3, 3), dtype=jnp.float32) * 0.1
    b = jax.random.normal(kb, (C_OUT,), dtype=jnp.float32) * 0.1

    out = net_forward(x, w, b)
    out = jax.block_until_ready(out)

    # Pure-JAX reference (valid conv + 2x2/stride-2 max pool) for correctness.
    ref_conv = jax.lax.conv_general_dilated(
        x, w.reshape(C_OUT, 1, 3, 3), window_strides=(1, 1), padding="VALID",
        dimension_numbers=("NCHW", "OIHW", "NCHW")) + b.reshape(1, C_OUT, 1, 1)
    ref = jax.lax.reduce_window(
        ref_conv, -jnp.inf, jax.lax.max,
        window_dimensions=(1, 1, 2, 2), window_strides=(1, 1, 2, 2),
        padding="VALID")

    assert out.shape == (N, C_OUT, (H - 2) // 2, (W - 2) // 2)
    np.testing.assert_allclose(np.asarray(out), np.asarray(ref),
                               rtol=1e-5, atol=1e-5)
    print("KERNEL_OK")
</pallas_src>

<mosaic_0001>
module attributes {stable_mosaic.version = 11 : i64} {
  func.func @conv_pool_kernel(%arg0: i32, %arg1: memref<18xf32, #tpu.memory_space<smem>>, %arg2: memref<2xf32, #tpu.memory_space<smem>>, %arg3: memref<1x4x8x8xf32, #tpu.memory_space<vmem>>, %arg4: memref<1x7x14xf32, #tpu.memory_space<vmem>>) attributes {dimension_semantics = [#tpu.dimension_semantics<parallel>], iteration_bounds = array<i64: 2>, scalar_prefetch = 0 : i64, scratch_operands = 0 : i64, tpu.core_type = #tpu.core_type<tc>, window_params = [{transform_indices = @transform_0, window_bounds = array<i64: 18>}, {transform_indices = @transform_1, window_bounds = array<i64: 2>}, {transform_indices = @transform_2, window_bounds = array<i64: 1, 4, 8, 8>}, {transform_indices = @transform_3, window_bounds = array<i64: 1, 7, 14>}]} {
    %c0 = arith.constant 0 : index
    %c0_0 = arith.constant 0 : index
    %c0_1 = arith.constant 0 : index
    %c0_2 = arith.constant 0 : index
    %0 = vector.load %arg3[%c0, %c0_0, %c0_1, %c0_2] : memref<1x4x8x8xf32, #tpu.memory_space<vmem>>, vector<1x1x8x8xf32>
    %1 = vector.shape_cast %0 : vector<1x1x8x8xf32> to vector<8x8xf32>
    %c0_3 = arith.constant 0 : index
    %c1 = arith.constant 1 : index
    %c0_4 = arith.constant 0 : index
    %c0_5 = arith.constant 0 : index
    %2 = vector.load %arg3[%c0_3, %c1, %c0_4, %c0_5] : memref<1x4x8x8xf32, #tpu.memory_space<vmem>>, vector<1x1x8x8xf32>
    %3 = vector.shape_cast %2 : vector<1x1x8x8xf32> to vector<8x8xf32>
    %c0_6 = arith.constant 0 : index
    %c2 = arith.constant 2 : index
    %c0_7 = arith.constant 0 : index
    %c0_8 = arith.constant 0 : index
    %4 = vector.load %arg3[%c0_6, %c2, %c0_7, %c0_8] : memref<1x4x8x8xf32, #tpu.memory_space<vmem>>, vector<1x1x8x8xf32>
    %5 = vector.shape_cast %4 : vector<1x1x8x8xf32> to vector<8x8xf32>
    %c0_9 = arith.constant 0 : index
    %c3 = arith.constant 3 : index
    %c0_10 = arith.constant 0 : index
    %c0_11 = arith.constant 0 : index
    %6 = vector.load %arg3[%c0_9, %c3, %c0_10, %c0_11] : memref<1x4x8x8xf32, #tpu.memory_space<vmem>>, vector<1x1x8x8xf32>
    %7 = vector.shape_cast %6 : vector<1x1x8x8xf32> to vector<8x8xf32>
    %cst = arith.constant 0.000000e+00 : f32
    %8 = vector.broadcast %cst : f32 to vector<7x7xf32>
    %9 = vector.extract_strided_slice %1 {offsets = [0, 0], sizes = [7, 7], strides = [1, 1]} : vector<8x8xf32> to vector<7x7xf32>
    %c0_12 = arith.constant 0 : index
    %10 = memref.load %arg1[%c0_12] : memref<18xf32, #tpu.memory_space<smem>>
    %11 = vector.broadcast %10 : f32 to vector<7x7xf32>
    %12 = arith.mulf %11, %9 : vector<7x7xf32>
    %13 = arith.addf %8, %12 : vector<7x7xf32>
    %14 = vector.extract_strided_slice %3 {offsets = [0, 0], sizes = [7, 7], strides = [1, 1]} : vector<8x8xf32> to vector<7x7xf32>
    %c1_13 = arith.constant 1 : index
    %15 = memref.load %arg1[%c1_13] : memref<18xf32, #tpu.memory_space<smem>>
    %16 = vector.broadcast %15 : f32 to vector<7x7xf32>
    %17 = arith.mulf %16, %14 : vector<7x7xf32>
    %18 = arith.addf %13, %17 : vector<7x7xf32>
    %19 = vector.extract_strided_slice %1 {offsets = [0, 1], sizes = [7, 7], strides = [1, 1]} : vector<8x8xf32> to vector<7x7xf32>
    %c2_14 = arith.constant 2 : index
    %20 = memref.load %arg1[%c2_14] : memref<18xf32, #tpu.memory_space<smem>>
    %21 = vector.broadcast %20 : f32 to vector<7x7xf32>
    %22 = arith.mulf %21, %19 : vector<7x7xf32>
    %23 = arith.addf %18, %22 : vector<7x7xf32>
    %24 = vector.extract_strided_slice %5 {offsets = [0, 0], sizes = [7, 7], strides = [1, 1]} : vector<8x8xf32> to vector<7x7xf32>
    %c3_15 = arith.constant 3 : index
    %25 = memref.load %arg1[%c3_15] : memref<18xf32, #tpu.memory_space<smem>>
    %26 = vector.broadcast %25 : f32 to vector<7x7xf32>
    %27 = arith.mulf %26, %24 : vector<7x7xf32>
    %28 = arith.addf %23, %27 : vector<7x7xf32>
    %29 = vector.extract_strided_slice %7 {offsets = [0, 0], sizes = [7, 7], strides = [1, 1]} : vector<8x8xf32> to vector<7x7xf32>
    %c4 = arith.constant 4 : index
    %30 = memref.load %arg1[%c4] : memref<18xf32, #tpu.memory_space<smem>>
    %31 = vector.broadcast %30 : f32 to vector<7x7xf32>
    %32 = arith.mulf %31, %29 : vector<7x7xf32>
    %33 = arith.addf %28, %32 : vector<7x7xf32>
    %34 = vector.extract_strided_slice %5 {offsets = [0, 1], sizes = [7, 7], strides = [1, 1]} : vector<8x8xf32> to vector<7x7xf32>
    %c5 = arith.constant 5 : index
    %35 = memref.load %arg1[%c5] : memref<18xf32, #tpu.memory_space<smem>>
    %36 = vector.broadcast %35 : f32 to vector<7x7xf32>
    %37 = arith.mulf %36, %34 : vector<7x7xf32>
    %38 = arith.addf %33, %37 : vector<7x7xf32>
    %39 = vector.extract_strided_slice %1 {offsets = [1, 0], sizes = [7, 7], strides = [1, 1]} : vector<8x8xf32> to vector<7x7xf32>
    %c6 = arith.constant 6 : index
    %40 = memref.load %arg1[%c6] : memref<18xf32, #tpu.memory_space<smem>>
    %41 = vector.broadcast %40 : f32 to vector<7x7xf32>
    %42 = arith.mulf %41, %39 : vector<7x7xf32>
    %43 = arith.addf %38, %42 : vector<7x7xf32>
    %44 = vector.extract_strided_slice %3 {offsets = [1, 0], sizes = [7, 7], strides = [1, 1]} : vector<8x8xf32> to vector<7x7xf32>
    %c7 = arith.constant 7 : index
    %45 = memref.load %arg1[%c7] : memref<18xf32, #tpu.memory_space<smem>>
    %46 = vector.broadcast %45 : f32 to vector<7x7xf32>
    %47 = arith.mulf %46, %44 : vector<7x7xf32>
    %48 = arith.addf %43, %47 : vector<7x7xf32>
    %49 = vector.extract_strided_slice %1 {offsets = [1, 1], sizes = [7, 7], strides = [1, 1]} : vector<8x8xf32> to vector<7x7xf32>
    %c8 = arith.constant 8 : index
    %50 = memref.load %arg1[%c8] : memref<18xf32, #tpu.memory_space<smem>>
    %51 = vector.broadcast %50 : f32 to vector<7x7xf32>
    %52 = arith.mulf %51, %49 : vector<7x7xf32>
    %53 = arith.addf %48, %52 : vector<7x7xf32>
    %cst_16 = arith.constant 0.000000e+00 : f32
    %54 = vector.broadcast %cst_16 : f32 to vector<7x7xf32>
    %55 = vector.extract_strided_slice %3 {offsets = [0, 0], sizes = [7, 7], strides = [1, 1]} : vector<8x8xf32> to vector<7x7xf32>
    %c0_17 = arith.constant 0 : index
    %56 = memref.load %arg1[%c0_17] : memref<18xf32, #tpu.memory_space<smem>>
    %57 = vector.broadcast %56 : f32 to vector<7x7xf32>
    %58 = arith.mulf %57, %55 : vector<7x7xf32>
    %59 = arith.addf %54, %58 : vector<7x7xf32>
    %60 = vector.extract_strided_slice %1 {offsets = [0, 1], sizes = [7, 7], strides = [1, 1]} : vector<8x8xf32> to vector<7x7xf32>
    %c1_18 = arith.constant 1 : index
    %61 = memref.load %arg1[%c1_18] : memref<18xf32, #tpu.memory_space<smem>>
    %62 = vector.broadcast %61 : f32 to vector<7x7xf32>
    %63 = arith.mulf %62, %60 : vector<7x7xf32>
    %64 = arith.addf %59, %63 : vector<7x7xf32>
    %65 = vector.extract_strided_slice %3 {offsets = [0, 1], sizes = [7, 7], strides = [1, 1]} : vector<8x8xf32> to vector<7x7xf32>
    %c2_19 = arith.constant 2 : index
    %66 = memref.load %arg1[%c2_19] : memref<18xf32, #tpu.memory_space<smem>>
    %67 = vector.broadcast %66 : f32 to vector<7x7xf32>
    %68 = arith.mulf %67, %65 : vector<7x7xf32>
    %69 = arith.addf %64, %68 : vector<7x7xf32>
    %70 = vector.extract_strided_slice %7 {offsets = [0, 0], sizes = [7, 7], strides = [1, 1]} : vector<8x8xf32> to vector<7x7xf32>
    %c3_20 = arith.constant 3 : index
    %71 = memref.load %arg1[%c3_20] : memref<18xf32, #tpu.memory_space<smem>>
    %72 = vector.broadcast %71 : f32 to vector<7x7xf32>
    %73 = arith.mulf %72, %70 : vector<7x7xf32>
    %74 = arith.addf %69, %73 : vector<7x7xf32>
    %75 = vector.extract_strided_slice %5 {offsets = [0, 1], sizes = [7, 7], strides = [1, 1]} : vector<8x8xf32> to vector<7x7xf32>
    %c4_21 = arith.constant 4 : index
    %76 = memref.load %arg1[%c4_21] : memref<18xf32, #tpu.memory_space<smem>>
    %77 = vector.broadcast %76 : f32 to vector<7x7xf32>
    %78 = arith.mulf %77, %75 : vector<7x7xf32>
    %79 = arith.addf %74, %78 : vector<7x7xf32>
    %80 = vector.extract_strided_slice %7 {offsets = [0, 1], sizes = [7, 7], strides = [1, 1]} : vector<8x8xf32> to vector<7x7xf32>
    %c5_22 = arith.constant 5 : index
    %81 = memref.load %arg1[%c5_22] : memref<18xf32, #tpu.memory_space<smem>>
    %82 = vector.broadcast %81 : f32 to vector<7x7xf32>
    %83 = arith.mulf %82, %80 : vector<7x7xf32>
    %84 = arith.addf %79, %83 : vector<7x7xf32>
    %85 = vector.extract_strided_slice %3 {offsets = [1, 0], sizes = [7, 7], strides = [1, 1]} : vector<8x8xf32> to vector<7x7xf32>
    %c6_23 = arith.constant 6 : index
    %86 = memref.load %arg1[%c6_23] : memref<18xf32, #tpu.memory_space<smem>>
    %87 = vector.broadcast %86 : f32 to vector<7x7xf32>
    %88 = arith.mulf %87, %85 : vector<7x7xf32>
    %89 = arith.addf %84, %88 : vector<7x7xf32>
    %90 = vector.extract_strided_slice %1 {offsets = [1, 1], sizes = [7, 7], strides = [1, 1]} : vector<8x8xf32> to vector<7x7xf32>
    %c7_24 = arith.constant 7 : index
    %91 = memref.load %arg1[%c7_24] : memref<18xf32, #tpu.memory_space<smem>>
    %92 = vector.broadcast %91 : f32 to vector<7x7xf32>
    %93 = arith.mulf %92, %90 : vector<7x7xf32>
    %94 = arith.addf %89, %93 : vector<7x7xf32>
    %95 = vector.extract_strided_slice %3 {offsets = [1, 1], sizes = [7, 7], strides = [1, 1]} : vector<8x8xf32> to vector<7x7xf32>
    %c8_25 = arith.constant 8 : index
    %96 = memref.load %arg1[%c8_25] : memref<18xf32, #tpu.memory_space<smem>>
    %97 = vector.broadcast %96 : f32 to vector<7x7xf32>
    %98 = arith.mulf %97, %95 : vector<7x7xf32>
    %99 = arith.addf %94, %98 : vector<7x7xf32>
    %100 = arith.maximumf %53, %99 : vector<7x7xf32>
    %cst_26 = arith.constant 0.000000e+00 : f32
    %101 = vector.broadcast %cst_26 : f32 to vector<7x7xf32>
    %102 = vector.extract_strided_slice %5 {offsets = [0, 0], sizes = [7, 7], strides = [1, 1]} : vector<8x8xf32> to vector<7x7xf32>
    %c0_27 = arith.constant 0 : index
    %103 = memref.load %arg1[%c0_27] : memref<18xf32, #tpu.memory_space<smem>>
    %104 = vector.broadcast %103 : f32 to vector<7x7xf32>
    %105 = arith.mulf %104, %102 : vector<7x7xf32>
    %106 = arith.addf %101, %105 : vector<7x7xf32>
    %107 = vector.extract_strided_slice %7 {offsets = [0, 0], sizes = [7, 7], strides = [1, 1]} : vector<8x8xf32> to vector<7x7xf32>
    %c1_28 = arith.constant 1 : index
    %108 = memref.load %arg1[%c1_28] : memref<18xf32, #tpu.memory_space<smem>>
    %109 = vector.broadcast %108 : f32 to vector<7x7xf32>
    %110 = arith.mulf %109, %107 : vector<7x7xf32>
    %111 = arith.addf %106, %110 : vector<7x7xf32>
    %112 = vector.extract_strided_slice %5 {offsets = [0, 1], sizes = [7, 7], strides = [1, 1]} : vector<8x8xf32> to vector<7x7xf32>
    %c2_29 = arith.constant 2 : index
    %113 = memref.load %arg1[%c2_29] : memref<18xf32, #tpu.memory_space<smem>>
    %114 = vector.broadcast %113 : f32 to vector<7x7xf32>
    %115 = arith.mulf %114, %112 : vector<7x7xf32>
    %116 = arith.addf %111, %115 : vector<7x7xf32>
    %117 = vector.extract_strided_slice %1 {offsets = [1, 0], sizes = [7, 7], strides = [1, 1]} : vector<8x8xf32> to vector<7x7xf32>
    %c3_30 = arith.constant 3 : index
    %118 = memref.load %arg1[%c3_30] : memref<18xf32, #tpu.memory_space<smem>>
    %119 = vector.broadcast %118 : f32 to vector<7x7xf32>
    %120 = arith.mulf %119, %117 : vector<7x7xf32>
    %121 = arith.addf %116, %120 : vector<7x7xf32>
    %122 = vector.extract_strided_slice %3 {offsets = [1, 0], sizes = [7, 7], strides = [1, 1]} : vector<8x8xf32> to vector<7x7xf32>
    %c4_31 = arith.constant 4 : index
    %123 = memref.load %arg1[%c4_31] : memref<18xf32, #tpu.memory_space<smem>>
    %124 = vector.broadcast %123 : f32 to vector<7x7xf32>
    %125 = arith.mulf %124, %122 : vector<7x7xf32>
    %126 = arith.addf %121, %125 : vector<7x7xf32>
    %127 = vector.extract_strided_slice %1 {offsets = [1, 1], sizes = [7, 7], strides = [1, 1]} : vector<8x8xf32> to vector<7x7xf32>
    %c5_32 = arith.constant 5 : index
    %128 = memref.load %arg1[%c5_32] : memref<18xf32, #tpu.memory_space<smem>>
    %129 = vector.broadcast %128 : f32 to vector<7x7xf32>
    %130 = arith.mulf %129, %127 : vector<7x7xf32>
    %131 = arith.addf %126, %130 : vector<7x7xf32>
    %132 = vector.extract_strided_slice %5 {offsets = [1, 0], sizes = [7, 7], strides = [1, 1]} : vector<8x8xf32> to vector<7x7xf32>
    %c6_33 = arith.constant 6 : index
    %133 = memref.load %arg1[%c6_33] : memref<18xf32, #tpu.memory_space<smem>>
    %134 = vector.broadcast %133 : f32 to vector<7x7xf32>
    %135 = arith.mulf %134, %132 : vector<7x7xf32>
    %136 = arith.addf %131, %135 : vector<7x7xf32>
    %137 = vector.extract_strided_slice %7 {offsets = [1, 0], sizes = [7, 7], strides = [1, 1]} : vector<8x8xf32> to vector<7x7xf32>
    %c7_34 = arith.constant 7 : index
    %138 = memref.load %arg1[%c7_34] : memref<18xf32, #tpu.memory_space<smem>>
    %139 = vector.broadcast %138 : f32 to vector<7x7xf32>
    %140 = arith.mulf %139, %137 : vector<7x7xf32>
    %141 = arith.addf %136, %140 : vector<7x7xf32>
    %142 = vector.extract_strided_slice %5 {offsets = [1, 1], sizes = [7, 7], strides = [1, 1]} : vector<8x8xf32> to vector<7x7xf32>
    %c8_35 = arith.constant 8 : index
    %143 = memref.load %arg1[%c8_35] : memref<18xf32, #tpu.memory_space<smem>>
    %144 = vector.broadcast %143 : f32 to vector<7x7xf32>
    %145 = arith.mulf %144, %142 : vector<7x7xf32>
    %146 = arith.addf %141, %145 : vector<7x7xf32>
    %147 = arith.maximumf %100, %146 : vector<7x7xf32>
    %cst_36 = arith.constant 0.000000e+00 : f32
    %148 = vector.broadcast %cst_36 : f32 to vector<7x7xf32>
    %149 = vector.extract_strided_slice %7 {offsets = [0, 0], sizes = [7, 7], strides = [1, 1]} : vector<8x8xf32> to vector<7x7xf32>
    %c0_37 = arith.constant 0 : index
    %150 = memref.load %arg1[%c0_37] : memref<18xf32, #tpu.memory_space<smem>>
    %151 = vector.broadcast %150 : f32 to vector<7x7xf32>
    %152 = arith.mulf %151, %149 : vector<7x7xf32>
    %153 = arith.addf %148, %152 : vector<7x7xf32>
    %154 = vector.extract_strided_slice %5 {offsets = [0, 1], sizes = [7, 7], strides = [1, 1]} : vector<8x8xf32> to vector<7x7xf32>
    %c1_38 = arith.constant 1 : index
    %155 = memref.load %arg1[%c1_38] : memref<18xf32, #tpu.memory_space<smem>>
    %156 = vector.broadcast %155 : f32 to vector<7x7xf32>
    %157 = arith.mulf %156, %154 : vector<7x7xf32>
    %158 = arith.addf %153, %157 : vector<7x7xf32>
    %159 = vector.extract_strided_slice %7 {offsets = [0, 1], sizes = [7, 7], strides = [1, 1]} : vector<8x8xf32> to vector<7x7xf32>
    %c2_39 = arith.constant 2 : index
    %160 = memref.load %arg1[%c2_39] : memref<18xf32, #tpu.memory_space<smem>>
    %161 = vector.broadcast %160 : f32 to vector<7x7xf32>
    %162 = arith.mulf %161, %159 : vector<7x7xf32>
    %163 = arith.addf %158, %162 : vector<7x7xf32>
    %164 = vector.extract_strided_slice %3 {offsets = [1, 0], sizes = [7, 7], strides = [1, 1]} : vector<8x8xf32> to vector<7x7xf32>
    %c3_40 = arith.constant 3 : index
    %165 = memref.load %arg1[%c3_40] : memref<18xf32, #tpu.memory_space<smem>>
    %166 = vector.broadcast %165 : f32 to vector<7x7xf32>
    %167 = arith.mulf %166, %164 : vector<7x7xf32>
    %168 = arith.addf %163, %167 : vector<7x7xf32>
    %169 = vector.extract_strided_slice %1 {offsets = [1, 1], sizes = [7, 7], strides = [1, 1]} : vector<8x8xf32> to vector<7x7xf32>
    %c4_41 = arith.constant 4 : index
    %170 = memref.load %arg1[%c4_41] : memref<18xf32, #tpu.memory_space<smem>>
    %171 = vector.broadcast %170 : f32 to vector<7x7xf32>
    %172 = arith.mulf %171, %169 : vector<7x7xf32>
    %173 = arith.addf %168, %172 : vector<7x7xf32>
    %174 = vector.extract_strided_slice %3 {offsets = [1, 1], sizes = [7, 7], strides = [1, 1]} : vector<8x8xf32> to vector<7x7xf32>
    %c5_42 = arith.constant 5 : index
    %175 = memref.load %arg1[%c5_42] : memref<18xf32, #tpu.memory_space<smem>>
    %176 = vector.broadcast %175 : f32 to vector<7x7xf32>
    %177 = arith.mulf %176, %174 : vector<7x7xf32>
    %178 = arith.addf %173, %177 : vector<7x7xf32>
    %179 = vector.extract_strided_slice %7 {offsets = [1, 0], sizes = [7, 7], strides = [1, 1]} : vector<8x8xf32> to vector<7x7xf32>
    %c6_43 = arith.constant 6 : index
    %180 = memref.load %arg1[%c6_43] : memref<18xf32, #tpu.memory_space<smem>>
    %181 = vector.broadcast %180 : f32 to vector<7x7xf32>
    %182 = arith.mulf %181, %179 : vector<7x7xf32>
    %183 = arith.addf %178, %182 : vector<7x7xf32>
    %184 = vector.extract_strided_slice %5 {offsets = [1, 1], sizes = [7, 7], strides = [1, 1]} : vector<8x8xf32> to vector<7x7xf32>
    %c7_44 = arith.constant 7 : index
    %185 = memref.load %arg1[%c7_44] : memref<18xf32, #tpu.memory_space<smem>>
    %186 = vector.broadcast %185 : f32 to vector<7x7xf32>
    %187 = arith.mulf %186, %184 : vector<7x7xf32>
    %188 = arith.addf %183, %187 : vector<7x7xf32>
    %189 = vector.extract_strided_slice %7 {offsets = [1, 1], sizes = [7, 7], strides = [1, 1]} : vector<8x8xf32> to vector<7x7xf32>
    %c8_45 = arith.constant 8 : index
    %190 = memref.load %arg1[%c8_45] : memref<18xf32, #tpu.memory_space<smem>>
    %191 = vector.broadcast %190 : f32 to vector<7x7xf32>
    %192 = arith.mulf %191, %189 : vector<7x7xf32>
    %193 = arith.addf %188, %192 : vector<7x7xf32>
    %194 = arith.maximumf %147, %193 : vector<7x7xf32>
    %c0_46 = arith.constant 0 : index
    %195 = memref.load %arg2[%c0_46] : memref<2xf32, #tpu.memory_space<smem>>
    %196 = vector.broadcast %195 : f32 to vector<7x7xf32>
    %197 = arith.addf %194, %196 : vector<7x7xf32>
    %c0_47 = arith.constant 0 : index
    %c0_48 = arith.constant 0 : index
    %c0_49 = arith.constant 0 : index
    %198 = vector.load %arg4[%c0_47, %c0_48, %c0_49] : memref<1x7x14xf32, #tpu.memory_space<vmem>>, vector<1x7x7xf32>
    %199 = vector.shape_cast %198 : vector<1x7x7xf32> to vector<7x7xf32>
    %200 = vector.shape_cast %197 : vector<7x7xf32> to vector<1x7x7xf32>
    tpu.vector_store %arg4[%c0_47, %c0_48, %c0_49], %200 {strides = array<i32>} : memref<1x7x14xf32, #tpu.memory_space<vmem>>, vector<1x7x7xf32>,
    %cst_50 = arith.constant 0.000000e+00 : f32
    %201 = vector.broadcast %cst_50 : f32 to vector<7x7xf32>
    %202 = vector.extract_strided_slice %1 {offsets = [0, 0], sizes = [7, 7], strides = [1, 1]} : vector<8x8xf32> to vector<7x7xf32>
    %c9 = arith.constant 9 : index
    %203 = memref.load %arg1[%c9] : memref<18xf32, #tpu.memory_space<smem>>
    %204 = vector.broadcast %203 : f32 to vector<7x7xf32>
    %205 = arith.mulf %204, %202 : vector<7x7xf32>
    %206 = arith.addf %201, %205 : vector<7x7xf32>
    %207 = vector.extract_strided_slice %3 {offsets = [0, 0], sizes = [7, 7], strides = [1, 1]} : vector<8x8xf32> to vector<7x7xf32>
    %c10 = arith.constant 10 : index
    %208 = memref.load %arg1[%c10] : memref<18xf32, #tpu.memory_space<smem>>
    %209 = vector.broadcast %208 : f32 to vector<7x7xf32>
    %210 = arith.mulf %209, %207 : vector<7x7xf32>
    %211 = arith.addf %206, %210 : vector<7x7xf32>
    %212 = vector.extract_strided_slice %1 {offsets = [0, 1], sizes = [7, 7], strides = [1, 1]} : vector<8x8xf32> to vector<7x7xf32>
    %c11 = arith.constant 11 : index
    %213 = memref.load %arg1[%c11] : memref<18xf32, #tpu.memory_space<smem>>
    %214 = vector.broadcast %213 : f32 to vector<7x7xf32>
    %215 = arith.mulf %214, %212 : vector<7x7xf32>
    %216 = arith.addf %211, %215 : vector<7x7xf32>
    %217 = vector.extract_strided_slice %5 {offsets = [0, 0], sizes = [7, 7], strides = [1, 1]} : vector<8x8xf32> to vector<7x7xf32>
    %c12 = arith.constant 12 : index
    %218 = memref.load %arg1[%c12] : memref<18xf32, #tpu.memory_space<smem>>
    %219 = vector.broadcast %218 : f32 to vector<7x7xf32>
    %220 = arith.mulf %219, %217 : vector<7x7xf32>
    %221 = arith.addf %216, %220 : vector<7x7xf32>
    %222 = vector.extract_strided_slice %7 {offsets = [0, 0], sizes = [7, 7], strides = [1, 1]} : vector<8x8xf32> to vector<7x7xf32>
    %c13 = arith.constant 13 : index
    %223 = memref.load %arg1[%c13] : memref<18xf32, #tpu.memory_space<smem>>
    %224 = vector.broadcast %223 : f32 to vector<7x7xf32>
    %225 = arith.mulf %224, %222 : vector<7x7xf32>
    %226 = arith.addf %221, %225 : vector<7x7xf32>
    %227 = vector.extract_strided_slice %5 {offsets = [0, 1], sizes = [7, 7], strides = [1, 1]} : vector<8x8xf32> to vector<7x7xf32>
    %c14 = arith.constant 14 : index
    %228 = memref.load %arg1[%c14] : memref<18xf32, #tpu.memory_space<smem>>
    %229 = vector.broadcast %228 : f32 to vector<7x7xf32>
    %230 = arith.mulf %229, %227 : vector<7x7xf32>
    %231 = arith.addf %226, %230 : vector<7x7xf32>
    %232 = vector.extract_strided_slice %1 {offsets = [1, 0], sizes = [7, 7], strides = [1, 1]} : vector<8x8xf32> to vector<7x7xf32>
    %c15 = arith.constant 15 : index
    %233 = memref.load %arg1[%c15] : memref<18xf32, #tpu.memory_space<smem>>
    %234 = vector.broadcast %233 : f32 to vector<7x7xf32>
    %235 = arith.mulf %234, %232 : vector<7x7xf32>
    %236 = arith.addf %231, %235 : vector<7x7xf32>
    %237 = vector.extract_strided_slice %3 {offsets = [1, 0], sizes = [7, 7], strides = [1, 1]} : vector<8x8xf32> to vector<7x7xf32>
    %c16 = arith.constant 16 : index
    %238 = memref.load %arg1[%c16] : memref<18xf32, #tpu.memory_space<smem>>
    %239 = vector.broadcast %238 : f32 to vector<7x7xf32>
    %240 = arith.mulf %239, %237 : vector<7x7xf32>
    %241 = arith.addf %236, %240 : vector<7x7xf32>
    %242 = vector.extract_strided_slice %1 {offsets = [1, 1], sizes = [7, 7], strides = [1, 1]} : vector<8x8xf32> to vector<7x7xf32>
    %c17 = arith.constant 17 : index
    %243 = memref.load %arg1[%c17] : memref<18xf32, #tpu.memory_space<smem>>
    %244 = vector.broadcast %243 : f32 to vector<7x7xf32>
    %245 = arith.mulf %244, %242 : vector<7x7xf32>
    %246 = arith.addf %241, %245 : vector<7x7xf32>
    %cst_51 = arith.constant 0.000000e+00 : f32
    %247 = vector.broadcast %cst_51 : f32 to vector<7x7xf32>
    %248 = vector.extract_strided_slice %3 {offsets = [0, 0], sizes = [7, 7], strides = [1, 1]} : vector<8x8xf32> to vector<7x7xf32>
    %c9_52 = arith.constant 9 : index
    %249 = memref.load %arg1[%c9_52] : memref<18xf32, #tpu.memory_space<smem>>
    %250 = vector.broadcast %249 : f32 to vector<7x7xf32>
    %251 = arith.mulf %250, %248 : vector<7x7xf32>
    %252 = arith.addf %247, %251 : vector<7x7xf32>
    %253 = vector.extract_strided_slice %1 {offsets = [0, 1], sizes = [7, 7], strides = [1, 1]} : vector<8x8xf32> to vector<7x7xf32>
    %c10_53 = arith.constant 10 : index
    %254 = memref.load %arg1[%c10_53] : memref<18xf32, #tpu.memory_space<smem>>
    %255 = vector.broadcast %254 : f32 to vector<7x7xf32>
    %256 = arith.mulf %255, %253 : vector<7x7xf32>
    %257 = arith.addf %252, %256 : vector<7x7xf32>
    %258 = vector.extract_strided_slice %3 {offsets = [0, 1], sizes = [7, 7], strides = [1, 1]} : vector<8x8xf32> to vector<7x7xf32>
    %c11_54 = arith.constant 11 : index
    %259 = memref.load %arg1[%c11_54] : memref<18xf32, #tpu.memory_space<smem>>
    %260 = vector.broadcast %259 : f32 to vector<7x7xf32>
    %261 = arith.mulf %260, %258 : vector<7x7xf32>
    %262 = arith.addf %257, %261 : vector<7x7xf32>
    %263 = vector.extract_strided_slice %7 {offsets = [0, 0], sizes = [7, 7], strides = [1, 1]} : vector<8x8xf32> to vector<7x7xf32>
    %c12_55 = arith.constant 12 : index
    %264 = memref.load %arg1[%c12_55] : memref<18xf32, #tpu.memory_space<smem>>
    %265 = vector.broadcast %264 : f32 to vector<7x7xf32>
    %266 = arith.mulf %265, %263 : vector<7x7xf32>
    %267 = arith.addf %262, %266 : vector<7x7xf32>
    %268 = vector.extract_strided_slice %5 {offsets = [0, 1], sizes = [7, 7], strides = [1, 1]} : vector<8x8xf32> to vector<7x7xf32>
    %c13_56 = arith.constant 13 : index
    %269 = memref.load %arg1[%c13_56] : memref<18xf32, #tpu.memory_space<smem>>
    %270 = vector.broadcast %269 : f32 to vector<7x7xf32>
    %271 = arith.mulf %270, %268 : vector<7x7xf32>
    %272 = arith.addf %267, %271 : vector<7x7xf32>
    %273 = vector.extract_strided_slice %7 {offsets = [0, 1], sizes = [7, 7], strides = [1, 1]} : vector<8x8xf32> to vector<7x7xf32>
    %c14_57 = arith.constant 14 : index
    %274 = memref.load %arg1[%c14_57] : memref<18xf32, #tpu.memory_space<smem>>
    %275 = vector.broadcast %274 : f32 to vector<7x7xf32>
    %276 = arith.mulf %275, %273 : vector<7x7xf32>
    %277 = arith.addf %272, %276 : vector<7x7xf32>
    %278 = vector.extract_strided_slice %3 {offsets = [1, 0], sizes = [7, 7], strides = [1, 1]} : vector<8x8xf32> to vector<7x7xf32>
    %c15_58 = arith.constant 15 : index
    %279 = memref.load %arg1[%c15_58] : memref<18xf32, #tpu.memory_space<smem>>
    %280 = vector.broadcast %279 : f32 to vector<7x7xf32>
    %281 = arith.mulf %280, %278 : vector<7x7xf32>
    %282 = arith.addf %277, %281 : vector<7x7xf32>
    %283 = vector.extract_strided_slice %1 {offsets = [1, 1], sizes = [7, 7], strides = [1, 1]} : vector<8x8xf32> to vector<7x7xf32>
    %c16_59 = arith.constant 16 : index
    %284 = memref.load %arg1[%c16_59] : memref<18xf32, #tpu.memory_space<smem>>
    %285 = vector.broadcast %284 : f32 to vector<7x7xf32>
    %286 = arith.mulf %285, %283 : vector<7x7xf32>
    %287 = arith.addf %282, %286 : vector<7x7xf32>
    %288 = vector.extract_strided_slice %3 {offsets = [1, 1], sizes = [7, 7], strides = [1, 1]} : vector<8x8xf32> to vector<7x7xf32>
    %c17_60 = arith.constant 17 : index
    %289 = memref.load %arg1[%c17_60] : memref<18xf32, #tpu.memory_space<smem>>
    %290 = vector.broadcast %289 : f32 to vector<7x7xf32>
    %291 = arith.mulf %290, %288 : vector<7x7xf32>
    %292 = arith.addf %287, %291 : vector<7x7xf32>
    %293 = arith.maximumf %246, %292 : vector<7x7xf32>
    %cst_61 = arith.constant 0.000000e+00 : f32
    %294 = vector.broadcast %cst_61 : f32 to vector<7x7xf32>
    %295 = vector.extract_strided_slice %5 {offsets = [0, 0], sizes = [7, 7], strides = [1, 1]} : vector<8x8xf32> to vector<7x7xf32>
    %c9_62 = arith.constant 9 : index
    %296 = memref.load %arg1[%c9_62] : memref<18xf32, #tpu.memory_space<smem>>
    %297 = vector.broadcast %296 : f32 to vector<7x7xf32>
    %298 = arith.mulf %297, %295 : vector<7x7xf32>
    %299 = arith.addf %294, %298 : vector<7x7xf32>
    %300 = vector.extract_strided_slice %7 {offsets = [0, 0], sizes = [7, 7], strides = [1, 1]} : vector<8x8xf32> to vector<7x7xf32>
    %c10_63 = arith.constant 10 : index
    %301 = memref.load %arg1[%c10_63] : memref<18xf32, #tpu.memory_space<smem>>
    %302 = vector.broadcast %301 : f32 to vector<7x7xf32>
    %303 = arith.mulf %302, %300 : vector<7x7xf32>
    %304 = arith.addf %299, %303 : vector<7x7xf32>
    %305 = vector.extract_strided_slice %5 {offsets = [0, 1], sizes = [7, 7], strides = [1, 1]} : vector<8x8xf32> to vector<7x7xf32>
    %c11_64 = arith.constant 11 : index
    %306 = memref.load %arg1[%c11_64] : memref<18xf32, #tpu.memory_space<smem>>
    %307 = vector.broadcast %306 : f32 to vector<7x7xf32>
    %308 = arith.mulf %307, %305 : vector<7x7xf32>
    %309 = arith.addf %304, %308 : vector<7x7xf32>
    %310 = vector.extract_strided_slice %1 {offsets = [1, 0], sizes = [7, 7], strides = [1, 1]} : vector<8x8xf32> to vector<7x7xf32>
    %c12_65 = arith.constant 12 : index
    %311 = memref.load %arg1[%c12_65] : memref<18xf32, #tpu.memory_space<smem>>
    %312 = vector.broadcast %311 : f32 to vector<7x7xf32>
    %313 = arith.mulf %312, %310 : vector<7x7xf32>
    %314 = arith.addf %309, %313 : vector<7x7xf32>
    %315 = vector.extract_strided_slice %3 {offsets = [1, 0], sizes = [7, 7], strides = [1, 1]} : vector<8x8xf32> to vector<7x7xf32>
    %c13_66 = arith.constant 13 : index
    %316 = memref.load %arg1[%c13_66] : memref<18xf32, #tpu.memory_space<smem>>
    %317 = vector.broadcast %316 : f32 to vector<7x7xf32>
    %318 = arith.mulf %317, %315 : vector<7x7xf32>
    %319 = arith.addf %314, %318 : vector<7x7xf32>
    %320 = vector.extract_strided_slice %1 {offsets = [1, 1], sizes = [7, 7], strides = [1, 1]} : vector<8x8xf32> to vector<7x7xf32>
    %c14_67 = arith.constant 14 : index
    %321 = memref.load %arg1[%c14_67] : memref<18xf32, #tpu.memory_space<smem>>
    %322 = vector.broadcast %321 : f32 to vector<7x7xf32>
    %323 = arith.mulf %322, %320 : vector<7x7xf32>
    %324 = arith.addf %319, %323 : vector<7x7xf32>
    %325 = vector.extract_strided_slice %5 {offsets = [1, 0], sizes = [7, 7], strides = [1, 1]} : vector<8x8xf32> to vector<7x7xf32>
    %c15_68 = arith.constant 15 : index
    %326 = memref.load %arg1[%c15_68] : memref<18xf32, #tpu.memory_space<smem>>
    %327 = vector.broadcast %326 : f32 to vector<7x7xf32>
    %328 = arith.mulf %327, %325 : vector<7x7xf32>
    %329 = arith.addf %324, %328 : vector<7x7xf32>
    %330 = vector.extract_strided_slice %7 {offsets = [1, 0], sizes = [7, 7], strides = [1, 1]} : vector<8x8xf32> to vector<7x7xf32>
    %c16_69 = arith.constant 16 : index
    %331 = memref.load %arg1[%c16_69] : memref<18xf32, #tpu.memory_space<smem>>
    %332 = vector.broadcast %331 : f32 to vector<7x7xf32>
    %333 = arith.mulf %332, %330 : vector<7x7xf32>
    %334 = arith.addf %329, %333 : vector<7x7xf32>
    %335 = vector.extract_strided_slice %5 {offsets = [1, 1], sizes = [7, 7], strides = [1, 1]} : vector<8x8xf32> to vector<7x7xf32>
    %c17_70 = arith.constant 17 : index
    %336 = memref.load %arg1[%c17_70] : memref<18xf32, #tpu.memory_space<smem>>
    %337 = vector.broadcast %336 : f32 to vector<7x7xf32>
    %338 = arith.mulf %337, %335 : vector<7x7xf32>
    %339 = arith.addf %334, %338 : vector<7x7xf32>
    %340 = arith.maximumf %293, %339 : vector<7x7xf32>
    %cst_71 = arith.constant 0.000000e+00 : f32
    %341 = vector.broadcast %cst_71 : f32 to vector<7x7xf32>
    %342 = vector.extract_strided_slice %7 {offsets = [0, 0], sizes = [7, 7], strides = [1, 1]} : vector<8x8xf32> to vector<7x7xf32>
    %c9_72 = arith.constant 9 : index
    %343 = memref.load %arg1[%c9_72] : memref<18xf32, #tpu.memory_space<smem>>
    %344 = vector.broadcast %343 : f32 to vector<7x7xf32>
    %345 = arith.mulf %344, %342 : vector<7x7xf32>
    %346 = arith.addf %341, %345 : vector<7x7xf32>
    %347 = vector.extract_strided_slice %5 {offsets = [0, 1], sizes = [7, 7], strides = [1, 1]} : vector<8x8xf32> to vector<7x7xf32>
    %c10_73 = arith.constant 10 : index
    %348 = memref.load %arg1[%c10_73] : memref<18xf32, #tpu.memory_space<smem>>
    %349 = vector.broadcast %348 : f32 to vector<7x7xf32>
    %350 = arith.mulf %349, %347 : vector<7x7xf32>
    %351 = arith.addf %346, %350 : vector<7x7xf32>
    %352 = vector.extract_strided_slice %7 {offsets = [0, 1], sizes = [7, 7], strides = [1, 1]} : vector<8x8xf32> to vector<7x7xf32>
    %c11_74 = arith.constant 11 : index
    %353 = memref.load %arg1[%c11_74] : memref<18xf32, #tpu.memory_space<smem>>
    %354 = vector.broadcast %353 : f32 to vector<7x7xf32>
    %355 = arith.mulf %354, %352 : vector<7x7xf32>
    %356 = arith.addf %351, %355 : vector<7x7xf32>
    %357 = vector.extract_strided_slice %3 {offsets = [1, 0], sizes = [7, 7], strides = [1, 1]} : vector<8x8xf32> to vector<7x7xf32>
    %c12_75 = arith.constant 12 : index
    %358 = memref.load %arg1[%c12_75] : memref<18xf32, #tpu.memory_space<smem>>
    %359 = vector.broadcast %358 : f32 to vector<7x7xf32>
    %360 = arith.mulf %359, %357 : vector<7x7xf32>
    %361 = arith.addf %356, %360 : vector<7x7xf32>
    %362 = vector.extract_strided_slice %1 {offsets = [1, 1], sizes = [7, 7], strides = [1, 1]} : vector<8x8xf32> to vector<7x7xf32>
    %c13_76 = arith.constant 13 : index
    %363 = memref.load %arg1[%c13_76] : memref<18xf32, #tpu.memory_space<smem>>
    %364 = vector.broadcast %363 : f32 to vector<7x7xf32>
    %365 = arith.mulf %364, %362 : vector<7x7xf32>
    %366 = arith.addf %361, %365 : vector<7x7xf32>
    %367 = vector.extract_strided_slice %3 {offsets = [1, 1], sizes = [7, 7], strides = [1, 1]} : vector<8x8xf32> to vector<7x7xf32>
    %c14_77 = arith.constant 14 : index
    %368 = memref.load %arg1[%c14_77] : memref<18xf32, #tpu.memory_space<smem>>
    %369 = vector.broadcast %368 : f32 to vector<7x7xf32>
    %370 = arith.mulf %369, %367 : vector<7x7xf32>
    %371 = arith.addf %366, %370 : vector<7x7xf32>
    %372 = vector.extract_strided_slice %7 {offsets = [1, 0], sizes = [7, 7], strides = [1, 1]} : vector<8x8xf32> to vector<7x7xf32>
    %c15_78 = arith.constant 15 : index
    %373 = memref.load %arg1[%c15_78] : memref<18xf32, #tpu.memory_space<smem>>
    %374 = vector.broadcast %373 : f32 to vector<7x7xf32>
    %375 = arith.mulf %374, %372 : vector<7x7xf32>
    %376 = arith.addf %371, %375 : vector<7x7xf32>
    %377 = vector.extract_strided_slice %5 {offsets = [1, 1], sizes = [7, 7], strides = [1, 1]} : vector<8x8xf32> to vector<7x7xf32>
    %c16_79 = arith.constant 16 : index
    %378 = memref.load %arg1[%c16_79] : memref<18xf32, #tpu.memory_space<smem>>
    %379 = vector.broadcast %378 : f32 to vector<7x7xf32>
    %380 = arith.mulf %379, %377 : vector<7x7xf32>
    %381 = arith.addf %376, %380 : vector<7x7xf32>
    %382 = vector.extract_strided_slice %7 {offsets = [1, 1], sizes = [7, 7], strides = [1, 1]} : vector<8x8xf32> to vector<7x7xf32>
    %c17_80 = arith.constant 17 : index
    %383 = memref.load %arg1[%c17_80] : memref<18xf32, #tpu.memory_space<smem>>
    %384 = vector.broadcast %383 : f32 to vector<7x7xf32>
    %385 = arith.mulf %384, %382 : vector<7x7xf32>
    %386 = arith.addf %381, %385 : vector<7x7xf32>
    %387 = arith.maximumf %340, %386 : vector<7x7xf32>
    %c1_81 = arith.constant 1 : index
    %388 = memref.load %arg2[%c1_81] : memref<2xf32, #tpu.memory_space<smem>>
    %389 = vector.broadcast %388 : f32 to vector<7x7xf32>
    %390 = arith.addf %387, %389 : vector<7x7xf32>
    %c0_82 = arith.constant 0 : index
    %c0_83 = arith.constant 0 : index
    %c7_84 = arith.constant 7 : index
    %391 = vector.load %arg4[%c0_82, %c0_83, %c7_84] : memref<1x7x14xf32, #tpu.memory_space<vmem>>, vector<1x7x7xf32>
    %392 = vector.shape_cast %391 : vector<1x7x7xf32> to vector<7x7xf32>
    %393 = vector.shape_cast %390 : vector<7x7xf32> to vector<1x7x7xf32>
    tpu.vector_store %arg4[%c0_82, %c0_83, %c7_84], %393 {strides = array<i32>} : memref<1x7x14xf32, #tpu.memory_space<vmem>>, vector<1x7x7xf32>,
    return
  }
  func.func @transform_0(%arg0: i32) -> i32 {
    %c0_i32 = arith.constant 0 : i32
    %c0_i32_0 = arith.constant 0 : i32
    return %c0_i32 : i32
  }
  func.func @transform_1(%arg0: i32) -> i32 {
    %c0_i32 = arith.constant 0 : i32
    %c0_i32_0 = arith.constant 0 : i32
    return %c0_i32 : i32
  }
  func.func @transform_2(%arg0: i32) -> (i32, i32, i32, i32) {
    %c0_i32 = arith.constant 0 : i32
    %c0_i32_0 = arith.constant 0 : i32
    %c0_i32_1 = arith.constant 0 : i32
    %c0_i32_2 = arith.constant 0 : i32
    return %arg0, %c0_i32, %c0_i32_0, %c0_i32_1 : i32, i32, i32, i32
  }
  func.func @transform_3(%arg0: i32) -> (i32, i32, i32) {
    %c0_i32 = arith.constant 0 : i32
    %c0_i32_0 = arith.constant 0 : i32
    %c0_i32_1 = arith.constant 0 : i32
    return %arg0, %c0_i32, %c0_i32_0 : i32, i32, i32
  }
}

</mosaic_0001>

<bundles_post_ra>
// kernel: tpu_custom_call.1
= control target key start
LH: loop header
LB: loop body
LE: loop exit
PB: predicated region body
PF: predicated region fallthrough
CT: control target
= control target key end

     0   :  { %8 = vsyncpa [#allocation4], 0  ;;  %s1271_s0 = inlined_call_operand.hbm [shape: f32[18], index: 0, kind: input, shape index: {}]   ;;  %s1272_s1 = inlined_call_operand.vmem [shape: f32[2], index: 1, kind: input, shape index: {}]   ;;  %s1273_s2 = inlined_call_operand.hbm [shape: f32[2,4,8,8], index: 2, kind: input, shape index: {}]   ;;  %s1274_s3 = inlined_call_operand.vmem [shape: f32[2,7,14], index: 3, kind: output, shape index: {}]  }
   0x1   :  { %9 = vsyncpa [#allocation5], 0 }
   0x2   :  { %10 = vsyncpa [#allocation3], 0 }
   0x3   :  { %12 = vsyncpa [#allocation3 + $0x1], 0  ;;  %s956_s12 = smov 0   ;;  %s958_s13 = smov 0  }
   0x4   :  { %s960_s14 = smov 0   ;;  %s962_s15 = smov 0  }
   0x5 LB: > { %s975_s16 = sadd.s32 4294967295, %s927_s15   ;;  %s978_s17 = sadd.s32 1, %s927_s15   ;;  %s927_s15 = sphi %s962_s15, %s1289_s15   ;;  %s923_s14 = sphi %s960_s14, %s1288_s14   ;;  %s919_s13 = sphi %s958_s13, %s1287_s13   ;;  %s915_s12 = sphi %s956_s12, %s1286_s12  }
   0x6   : > { %s64_s18 = ssub.s32 %s927_s15, %s978_s17  ;;  %s67_s19 = sadd.s32 1, %s923_s14 }
   0x7   : > { %p65_p0 = scmp.eq.s32.totalorder %s64_s18, 0  ;;  %p74_p1 = scmp.ne.s32.totalorder %s923_s14, %s919_s13 }
   0x8   : > { %p75_p2 = scmp.eq.s32.totalorder %s927_s15, 0  ;;  %p80_p3 = scmp.ne.s32.totalorder %s919_s13, %s915_s12 }
   0x9   : > { %s988_s20 = scalar_select %p65_p0, %s923_s14, %s67_s19  }
   0xa   : > { %p76_p4 = por %p75_p2, %p74_p1  ;;  %p1275_p5 = scmp.eq.s32.totalorder %s975_s16, 0 }
   0xb   : > { %p727_p6 = scmp.ge.s32.totalorder %s927_s15, 1  ;;  %p117_p7 = scmp.lt.s32.totalorder %s927_s15, 3 }
   0xc   : > { %p995_p8 = por %p1275_p5, %p80_p3  ;;  %p786_p10 = scmp.lt.s32.totalorder %s927_s15, 2 }
   0xd   : > { %p999_p9 = pnand %p727_p6, %p117_p7  ;;  %s139_s25 = sshll.u32 %s1272_s1, 4  ;;  %s140_s25 = int_to_ptr.vmem [resolvable:$true] %s139_s25 }
   0xe   : > { %s1277_s21 = scalar_select %p995_p8, 1, 0 }
   0xf   : > { %p773_p11 = pneg %p999_p9  ;;  %p1009_p12 = pnand %p786_p10, %p76_p4 }
  0x10   : > { %s150_s28 = sand.u32 1, %s923_s14   ;;  %s827_s4 = scalar_lea.hbm %s1271_s0, 16 }
  0x11   : > { %p1015_p13 = pnand %p773_p11, %p1275_p5  ;;  %p828_p0 = scmp.ne.s32.totalorder %s1271_s0, %s827_s4 }
  0x12   : > { %p834_p4 = scmp.lt.u32.totalorder %s827_s4, %s1271_s0 }
  0x13   : > { %p829_p1 = pneg %p1015_p13 }
  0x15   : > { %p830_p2 = pnand %p829_p1, %p828_p0 }
  0x17   : > { %p831_p3 = pneg %p830_p2 }
  0x19   : > { %p836_p6 = pnand %p834_p4, %p831_p3 }
  0x1b   : > { %839 = shalt.err (!%p836_p6)
}
  0x1c   : > { %s929_s9 = smov [#allocation2]   ;;  %s840_s12 = scalar_lea.vmem %s140_s25, 16 }
  0x1d   : > { %776 = dma.hbm_to_smem (!%p1015_p13), %s1271_s0, 16, %s929_s9, [#allocation4]  }
  0x1e   : > { %p841_p7 = scmp.ne.s32.totalorder %s140_s25, %s840_s12  ;;  %p848_p5 = scmp.lt.s32.totalorder %s140_s25, %s140_s25 }
  0x1f   : > { %p849_p0 = scmp.lt.s32.totalorder %s840_s12, %s840_s12 }
  0x20   : > { %p843_p10 = pnand %p841_p7, %p829_p1 }
  0x21   : > { %p850_p2 = por %p849_p0, %p848_p5 }
  0x22   : > { %p844_p11 = pneg %p843_p10 }
  0x24   : > { %p851_p8 = pnand %p850_p2, %p844_p11 }
  0x26   : > { %854 = shalt.err (!%p851_p8)
}
  0x27   : > { %s930_s18 = smov [#allocation6]   ;;  %s731_s19 = sshll.u32 %s150_s28, 5 }
  0x28   : > { %779 = dma.vmem_to_smem (!%p1015_p13), %s140_s25, 16, %s930_s18, [#allocation5]  }
  0x29   : > { %s762_s23 = sshll.u32 %s927_s15, 9  ;;  %s154_s4 = scalar_lea.vmem [#allocation7], %s731_s19 }
  0x2a   : > { %s1042_s30 = scalar_lea.hbm %s1273_s2, %s762_s23  ;;  %s161_s5 = sshll.u32 %s154_s4, 4  ;;  %s1044_s5 = int_to_ptr.vmem [resolvable:$true] %s161_s5 }
  0x2b   : > { %s1046_s27 = scalar_lea.sflag [#allocation3], %s150_s28  ;;  %s855_s6 = scalar_lea.hbm %s1042_s30, 512 }
  0x2c   : > { %p856_p5 = scmp.ne.s32.totalorder %s1042_s30, %s855_s6  ;;  %p857_p8 = pneg %p1009_p12 }
  0x2d   : > { %s860_s7 = scalar_lea.hbm %s1273_s2, 1024  ;;  %p861_p3 = scmp.lt.u32.totalorder %s1042_s30, %s1273_s2 }
  0x2e   : > { %p858_p13 = pnand %p857_p8, %p856_p5  ;;  %p862_p4 = scmp.lt.u32.totalorder %s860_s7, %s855_s6 }
  0x2f   : > { %p864_p7 = scmp.lt.u32.totalorder %s855_s6, %s1042_s30 }
  0x30   : > { %p859_p1 = pneg %p858_p13  ;;  %p863_p6 = por %p862_p4, %p861_p3 }
  0x32   : > { %p865_p10 = por %p864_p7, %p863_p6 }
  0x34   : > { %p866_p11 = pnand %p865_p10, %p859_p1 }
  0x36   : > { %869 = shalt.err (!%p866_p11)
}
  0x37   : > { %s870_s28 = scalar_lea.vmem %s1044_s5, 512  ;;  %s931_s10 = smov [#allocation7]  }
  0x38   : > { %p871_p0 = scmp.ne.s32.totalorder %s1044_s5, %s870_s28  ;;  %s875_s11 = sshll.u32 %s931_s10, 4  ;;  %s876_s11 = int_to_ptr.vmem [resolvable:$false] %s875_s11 }
  0x39   : > { %s877_s12 = scalar_lea.vmem %s876_s11, 1024  ;;  %p878_p13 = scmp.lt.s32.totalorder %s1044_s5, %s876_s11 }
  0x3a   : > { %p873_p2 = pnand %p871_p0, %p857_p8  ;;  %p879_p3 = scmp.lt.s32.totalorder %s877_s12, %s870_s28 }
  0x3c   : > { %p874_p5 = pneg %p873_p2  ;;  %p880_p4 = por %p879_p3, %p878_p13 }
  0x3e   : > { %p881_p6 = pnand %p880_p4, %p874_p5 }
  0x40   : > { %884 = shalt.err (!%p881_p6)
}
  0x41   : > { %s932_s18 = smov 128   ;;  %s933_s19 = smov 8  }
  0x42   : > { %783 = dma.hbm_to_vmem [thread:$0]  (!%p1009_p12), %s1042_s30, 512, %s1044_s5, %s1046_s27, %s932_s18, %s932_s18, %s933_s19  }
  0x43   : > { %173 = sbr.rel (%p999_p9) target bundleno = 365 (0x16d), region = 32  ;;  %p1281_p8 = scmp.eq.s32.totalorder (!%p999_p9), %s975_s16, 0 }
  0x4a   : > { %902 = dma.done.wait (%p1281_p8), [#allocation4], 16   ;;  %p1282_p1 = pmov %p1281_p8 }
  0x4c   : > { %904 = vsyncadd (%p1282_p1), [#allocation4], 4294967280  ;;  %p1283_p7 = pmov %p1282_p1 }
  0x4d   : > { %p1284_p10 = pmov %p1282_p1 }
  0x4e   : > { %906 = dma.done.wait (%p1283_p7), [#allocation5], 16  }
  0x4f   : > { %908 = vsyncadd (%p1284_p10), [#allocation5], 4294967280  ;;  %s183_s23 = sand.u32 1, %s919_s13   ;;  %p1285_p12 = scmp.ne.s32.totalorder %s1277_s21, 0 }
  0x50   : > { %s737_s26 = sshll.u32 %s183_s23, 5  ;;  %s184_s24 = scalar_lea.sflag [#allocation3], %s183_s23 }
  0x51   : > { %s187_s29 = scalar_lea.vmem [#allocation7], %s737_s26 }
  0x52   : > { %910 = dma.done.wait (%p1285_p12), %s184_s24, 512  }
  0x53   : > { %912 = vsyncadd (%p1285_p12), %s184_s24, 4294966784 }
  0x54   : > { %192 = sfence }
  0x55   : > { %s752_s22 = sld [smem:[#allocation2 + $0xb]]  ;;  %s751_s30 = sld [smem:[#allocation2 + $0xa]]  ;;  %v1089_v0 = vld [vmem:[%s187_s29 + $0x8] sm:$0xff]  ;;  %v1091_v1 = vld [vmem:[%s187_s29] sm:$0xff]  ;;  %v1093_v3 = vld [vmem:[%s187_s29 + $0x10] sm:$0xff]  ;;  %vm425_vm0 = vcmask 55296  }
  0x56   : > { %s754_s4 = sld [smem:[#allocation2 + $0xd]]  ;;  %s755_s5 = sld [smem:[#allocation2 + $0xe]]  ;;  %v1105_v13 = vld [vmem:[%s187_s29 + $0x18] sm:$0xff]  ;;  %vm635_vm1 = vcmask 112696  }
  0x57   : > { %s934_s27 = smov 127   ;;  %s757_s21 = sld [smem:[#allocation2 + $0x10]] }
  0x58   : > { %s750_s6 = sld [smem:[#allocation2 + $0x9]]  ;;  %s743_s7 = sld [smem:[#allocation2 + $0x2]] }
  0x59   : > { %s758_s15 = sld [smem:[#allocation2 + $0x11]]  ;;  %s745_s8 = sld [smem:[#allocation2 + $0x4]] }
  0x5a   : > { %s742_s25 = sld [smem:[#allocation2 + $0x1]]  ;;  %s221_s9 = sld [smem:[#allocation2]] }
  0x5b   : > { %v436_v2 = vstv %s752_s22  ;;  %v432_v5 = vstv %s751_s30  ;;  %s746_s28 = sld [smem:[#allocation2 + $0x5]]  ;;  %s748_s10 = sld [smem:[#allocation2 + $0x7]] }
  0x5c   : > { %v490_v4 = vmul.f32 %v1089_v0, %v436_v2  ;;  %v484_v6 = vmul.f32 %v432_v5, %v1091_v1  ;;  %v534_v7 = vmul.f32 %v1093_v3, %v436_v2  ;;  %v437_v8 = vmul.f32 %v436_v2, %v1091_v1  ;;  %s749_s11 = sld [smem:[#allocation2 + $0x8]]  ;;  %s753_s12 = sld [smem:[#allocation2 + $0xc]] }
  0x5d   : > { %v448_v9 = vstv %s754_s4  ;;  %v577_v11 = vmul.f32 %v1093_v3, %v432_v5  ;;  %v452_v12 = vstv %s755_s5  ;;  %v583_v16 = vmul.f32 %v1105_v13, %v436_v2  ;;  %s756_s18 = sld [smem:[#allocation2 + $0xf]]  ;;  %s744_s19 = sld [smem:[#allocation2 + $0x3]] }
  0x5e   : > { %492 = vrot.lane.b32.xlu1 %v490_v4, %s934_s27  ;;  %486 = vrot.lane.b32.xlu0 %v484_v6, %s934_s27  ;;  %v498_v10 = vmul.f32 %v1093_v3, %v448_v9  ;;  %v453_v14 = vmul.f32 %v1093_v3, %v452_v12  ;;  %v550_v15 = vmul.f32 %v452_v12, %v1091_v1  ;;  %v467_v17 = vstv %s757_s21  ;;  %s759_s23 = sld [smem:[#allocation6 + $0x1]]  ;;  %s747_s26 = sld [smem:[#allocation2 + $0x6]] }
  0x5f   : > { %v1112_v18 = vstv %s750_s6  ;;  %v532_v20 = vmul.f32 %v1105_v13, %v432_v5  ;;  %v433_v21 = vmul.f32 %v1089_v0, %v432_v5  ;;  %v515_v24 = vmul.f32 %v467_v17, %v1091_v1  ;;  %s935_s24 = smov 7   ;;  %p210_p9 = scmp.lt.s32.totalorder %s975_s16, 1 }
  0x60   : > { %v530_v19 = vmul.f32 %v1093_v3, %v1112_v18  ;;  %v429_v22 = vmul.f32 %v1112_v18, %v1091_v1  ;;  %v552_v23 = vrot.slane %v550_v15, 1  ;;  %v504_v26 = vmul.f32 %v1105_v13, %v452_v12  ;;  %s422_s29 = sld [smem:[#allocation6]] }
  0x61   : > { %v594_v27 = vmul.f32 %v448_v9, %v1091_v1  ;;  %v474_v28 = vstv %s758_s15  ;;  %v1130_v30 = vmul.f32 %v1105_v13, %v448_v9  ;;  %v517_v31 = vrot.slane %v515_v24, 1  ;;  %s1291_s16 = smov (!%p210_p9, %s975_s16), 1 }
  0x62   : > { %536 = vrot.lane.b32.xlu1 %v534_v7, %s934_s27  ;;  %439 = vrot.lane.b32.xlu0 %v437_v8, %s934_s27  ;;  %v1122_v25 = vadd.f32 %v532_v20, %v530_v19  ;;  %v1127_v29 = vadd.f32 %v433_v21, %v429_v22  ;;  %v475_v32 = vmul.f32 %v474_v28, %v1091_v1  ;;  %v226_v46 = vstv %s742_s25  ;;  %s738_s22 = sshll.u32 %s1291_s16, 3 }
  0x63   : > { %v1135_v33 = vmul.f32 %v1089_v0, %v448_v9  ;;  %v596_v34 = vrot.slane %v594_v27, 1  ;;  %v601_v35 = vmul.f32 %v1089_v0, %v452_v12  ;;  %v567_v37 = vmul.f32 %v1093_v3, %v474_v28  ;;  %s213_s5 = scalar_lea.vmem %s1274_s3, %s738_s22 }
  0x64   : > { %v477_v36 = vrot.slane %v475_v32, 1  ;;  %v1142_v38 = vmul.f32 %v1089_v0, %v467_v17  ;;  %v1145_v39 = vmul.f32 %v1105_v13, %v467_v17  ;;  %v522_v41 = vmul.f32 %v1089_v0, %v474_v28 }
  0x65   : > { %v603_v40 = vrot.slane %v601_v35, 1  ;;  %v569_v42 = vrot.slane %v567_v37, 1  ;;  %v620_v43 = vmul.f32 %v1105_v13, %v474_v28  ;;  %v613_v45 = vmul.f32 %v1093_v3, %v467_v17 }
  0x66   : > { %500 = vrot.lane.b32.xlu1 %v498_v10, %s934_s27  ;;  %579 = vrot.lane.b32.xlu0 %v577_v11, %s934_s27  ;;  %v524_v44 = vrot.slane %v522_v41, 1  ;;  %v227_v48 = vmul.f32 %v1089_v0, %v226_v46  ;;  %v326_v49 = vmul.f32 %v1105_v13, %v226_v46  ;;  %v230_v51 = vstv %s743_s7 }
  0x67   : > { %v622_v47 = vrot.slane %v620_v43, 1  ;;  %v615_v50 = vrot.slane %v613_v45, 1  ;;  %v231_v52 = vmul.f32 %v230_v51, %v1091_v1  ;;  %v278_v53 = vmul.f32 %v226_v46, %v1091_v1 }
  0x68   : > { %v1161_v54 = vstv %s221_s9  ;;  %v242_v55 = vstv %s745_s8  ;;  %v328_v58 = vmul.f32 %v1093_v3, %v230_v51  ;;  %v284_v60 = vmul.f32 %v1089_v0, %v230_v51 }
  0x69   : > { %v223_v56 = vmul.f32 %v1161_v54, %v1091_v1  ;;  %v324_v57 = vmul.f32 %v1093_v3, %v1161_v54  ;;  %v1170_v59 = vmul.f32 %v1105_v13, %v242_v55  ;;  %v292_v63 = vmul.f32 %v1093_v3, %v242_v55 }
  0x6a   : > { %455 = vrot.lane.b32.xlu1 %v453_v14, %s934_s27  ;;  %585 = vrot.lane.b32.xlu0 %v583_v16, %s934_s27  ;;  %v1181_v2 = vmul.f32 %v1089_v0, %v242_v55  ;;  %v371_v4 = vmul.f32 %v1093_v3, %v226_v46  ;;  %v246_v5 = vstv %s746_s28  ;;  %v377_v8 = vmul.f32 %v1105_v13, %v230_v51 }
  0x6b   : > { %v1174_v61 = vadd.f32 %v227_v48, %v223_v56  ;;  %v1176_v62 = vadd.f32 %v326_v49, %v324_v57  ;;  %v247_v6 = vmul.f32 %v1093_v3, %v246_v5  ;;  %v344_v7 = vmul.f32 %v246_v5, %v1091_v1 }
  0x6c   : > { %v261_v9 = vstv %s748_s10  ;;  %v298_v14 = vmul.f32 %v1105_v13, %v246_v5  ;;  %v388_v15 = vmul.f32 %v242_v55, %v1091_v1  ;;  %v268_v16 = vstv %s749_s11 }
  0x6d   : > { %v346_v10 = vrot.slane %v344_v7, 1  ;;  %v309_v11 = vmul.f32 %v261_v9, %v1091_v1  ;;  %v1193_v12 = vmul.f32 %v1089_v0, %v261_v9  ;;  %v269_v19 = vmul.f32 %v268_v16, %v1091_v1 }
  0x6e   : > { %553 = vrot.lane.b32.xlu1 %v552_v23, %s934_s27  ;;  %506 = vrot.lane.b32.xlu0 %v504_v26, %s934_s27  ;;  %v390_v20 = vrot.slane %v388_v15, 1  ;;  %v395_v21 = vmul.f32 %v1089_v0, %v246_v5  ;;  %v1203_v22 = vmul.f32 %v1105_v13, %v261_v9  ;;  %v361_v24 = vmul.f32 %v1093_v3, %v268_v16 }
  0x6f   : > { %v311_v17 = vrot.slane %v309_v11, 1  ;;  %v271_v23 = vrot.slane %v269_v19, 1  ;;  %v316_v27 = vmul.f32 %v1089_v0, %v268_v16  ;;  %v482_v37 = vmul.f32 %v1089_v0, %v1112_v18 }
  0x70   : > { %v397_v26 = vrot.slane %v395_v21, 1  ;;  %v363_v28 = vrot.slane %v361_v24, 1 }
  0x71   : > { %v318_v32 = vrot.slane %v316_v27, 1 }
  0x72   : > { %518 = vrot.lane.b32.xlu1 %v517_v31, %s934_s27  ;;  %597 = vrot.lane.b32.xlu0 %v596_v34, %s934_s27  ;;  %v414_v31 = vmul.f32 %v1105_v13, %v268_v16  ;;  %v407_v34 = vmul.f32 %v1093_v3, %v261_v9  ;;  %v470_v16 = vrot.slane %v1142_v38, 1 }
  0x74   : > { %v416_v35 = vrot.slane %v414_v31, 1 }
  0x76   : > { %478 = vrot.lane.b32.xlu1 %v477_v36, %s934_s27  ;;  %604 = vrot.lane.b32.xlu0 %v603_v40, %s934_s27  ;;  %v409_v36 = vrot.slane %v407_v34, 1  ;;  %v444_v40 = vstv %s753_s12 }
  0x77   : > { %v540_v41 = vmul.f32 %v444_v40, %v1091_v1  ;;  %v496_v45 = vmul.f32 %v1105_v13, %v444_v40  ;;  %v445_v49 = vmul.f32 %v1093_v3, %v444_v40  ;;  %v589_v5 = vmul.f32 %v1089_v0, %v444_v40 }
  0x79   : > { %v542_v46 = vrot.slane %v540_v41, 1  ;;  %v591_v11 = vrot.slane %v589_v5, 1 }
  0x7a   : > { %570 = vrot.lane.b32.xlu1 %v569_v42, %s934_s27  ;;  %525 = vrot.lane.b32.xlu0 %v524_v44, %s934_s27 }
  0x7e   : > { %623 = vrot.lane.b32.xlu1 %v622_v47, %s934_s27  ;;  %616 = vrot.lane.b32.xlu0 %v615_v50, %s934_s27  ;;  %v460_v50 = vstv %s756_s18 }
  0x82   : > { %233 = vrot.lane.b32.xlu1 %v231_v52, %s934_s27  ;;  %280 = vrot.lane.b32.xlu0 %v278_v53, %s934_s27  ;;  %v547_v53 = vrot.slane %v1135_v33, 1  ;;  %v557_v33 = vmul.f32 %v1093_v3, %v460_v50 }
  0x84   : > { %v559_v19 = vrot.slane %v557_v33, 1 }
  0x86   : > { %330 = vrot.lane.b32.xlu1 %v328_v58, %s934_s27  ;;  %286 = vrot.lane.b32.xlu0 %v284_v60, %s934_s27  ;;  %v461_v58 = vmul.f32 %v460_v50, %v1091_v1 }
  0x8a   : > { %294 = vrot.lane.b32.xlu1 %v292_v63, %s934_s27  ;;  %373 = vrot.lane.b32.xlu0 %v371_v4, %s934_s27  ;;  %v575_v4 = vmul.f32 %v1105_v13, %v1112_v18 }
  0x8e   : > { %249 = vrot.lane.b32.xlu1 %v247_v6, %s934_s27  ;;  %379 = vrot.lane.b32.xlu0 %v377_v8, %s934_s27  ;;  %v463_v8 = vrot.slane %v461_v58, 1  ;;  %v276_v58 = vmul.f32 %v1089_v0, %v1161_v54 }
  0x92   : > { %347 = vrot.lane.b32.xlu1 %v346_v10, %s934_s27  ;;  %300 = vrot.lane.b32.xlu0 %v298_v14, %s934_s27  ;;  %v510_v10 = vmul.f32 %v1089_v0, %v460_v50 }
  0x96   : > { %312 = vrot.lane.b32.xlu1 %v311_v17, %s934_s27  ;;  %391 = vrot.lane.b32.xlu0 %v390_v20, %s934_s27 }
  0x9a   : > { %272 = vrot.lane.b32.xlu1 %v271_v23, %s934_s27  ;;  %398 = vrot.lane.b32.xlu0 %v397_v26, %s934_s27  ;;  %v512_v23 = vrot.slane %v510_v10, 1 }
  0x9e   : > { %364 = vrot.lane.b32.xlu1 %v363_v28, %s934_s27  ;;  %319 = vrot.lane.b32.xlu0 %v318_v32, %s934_s27  ;;  %v564_v28 = vrot.slane %v1145_v39, 1 }
  0xa2   : > { %417 = vrot.lane.b32.xlu1 %v416_v35, %s934_s27  ;;  %410 = vrot.lane.b32.xlu0 %v409_v36, %s934_s27  ;;  %v608_v36 = vmul.f32 %v1105_v13, %v460_v50 }
  0xd0   : > { %v493_v42 = vpop.permute.xlu1 %492  ;;  %v487_v43 = vpop.permute.xlu0 %486 }
  0xd1   : > { %v489_v44 = vadd.f32 %v487_v43, %v482_v37 }
  0xd3   : > { %v495_v47 = vadd.f32 %v493_v42, %v489_v44  ;;  %v610_v42 = vrot.slane %v608_v36, 1 }
  0xd4   : > { %v537_v48 = vpop.permute.xlu1 %536  ;;  %v440_v52 = vpop.permute.xlu0 %439 }
  0xd5   : > { %v539_v51 = vadd.f32 %v537_v48, %v1122_v25  ;;  %v442_v55 = vadd.f32 %v440_v52, %v1127_v29  ;;  %v497_v56 = vadd.f32 %v496_v45, %v495_v47 }
  0xd7   : > { %v544_v57 = vadd.f32 %v542_v46, %v539_v51  ;;  %v446_v60 = vadd.f32 %v445_v49, %v442_v55  ;;  %v238_v55 = vstv %s744_s19 }
  0xd8   : > { %v501_v63 = vpop.permute.xlu1 %500  ;;  %v580_v6 = vpop.permute.xlu0 %579 }
  0xd9   : > { %v549_v7 = vadd.f32 %v547_v53, %v544_v57  ;;  %v450_v25 = vadd.f32 %v1130_v30, %v446_v60  ;;  %v582_v9 = vadd.f32 %v580_v6, %v575_v4  ;;  %v503_v20 = vadd.f32 %v501_v63, %v497_v56 }
  0xda   : > { %v239_v60 = vmul.f32 %v1093_v3, %v238_v55  ;;  %v334_v63 = vmul.f32 %v238_v55, %v1091_v1  ;;  %v629_v6 = vstv %s759_s23 }
  0xdc   : > { %v456_v29 = vpop.permute.xlu1 %455  ;;  %v586_v15 = vpop.permute.xlu0 %585 }
  0xdd   : > { %v458_v14 = vadd.f32 %v456_v29, %v450_v25  ;;  %v588_v17 = vadd.f32 %v586_v15, %v582_v9  ;;  %v336_v29 = vrot.slane %v334_v63, 1  ;;  %v254_v15 = vstv %s747_s26 }
  0xdf   : > { %v465_v18 = vadd.f32 %v463_v8, %v458_v14  ;;  %v593_v24 = vadd.f32 %v591_v11, %v588_v17  ;;  %v290_v14 = vmul.f32 %v1105_v13, %v238_v55 }
  0xe0   : > { %v554_v21 = vpop.permute.xlu1 %553  ;;  %v507_v26 = vpop.permute.xlu0 %506 }
  0xe1   : > { %v556_v30 = vadd.f32 %v554_v21, %v549_v7  ;;  %v472_v27 = vadd.f32 %v470_v16, %v465_v18  ;;  %v509_v31 = vadd.f32 %v507_v26, %v503_v20  ;;  %v383_v26 = vmul.f32 %v1089_v0, %v238_v55 }
  0xe3   : > { %v561_v32 = vadd.f32 %v559_v19, %v556_v30  ;;  %v514_v35 = vadd.f32 %v512_v23, %v509_v31  ;;  %v341_v19 = vrot.slane %v1181_v2, 1  ;;  %v255_v23 = vmul.f32 %v254_v15, %v1091_v1 }
  0xe4   : > { %v519_v34 = vpop.permute.xlu1 %518  ;;  %v598_v37 = vpop.permute.xlu0 %597 }
  0xe5   : > { %v566_v38 = vadd.f32 %v564_v28, %v561_v32  ;;  %v600_v40 = vadd.f32 %v598_v37, %v593_v24  ;;  %v521_v45 = vadd.f32 %v519_v34, %v514_v35  ;;  %v257_v31 = vrot.slane %v255_v23, 1 }
  0xe6   : > { %v385_v32 = vrot.slane %v383_v26, 1  ;;  %v304_v34 = vmul.f32 %v1089_v0, %v254_v15 }
  0xe8   : > { %v479_v41 = vpop.permute.xlu1 %478  ;;  %v605_v43 = vpop.permute.xlu0 %604 }
  0xe9   : > { %v607_v44 = vadd.f32 %v605_v43, %v600_v40  ;;  %v481_v39 = vadd.f32 %v479_v41, %v472_v27  ;;  %v306_v43 = vrot.slane %v304_v34, 1 }
  0xeb   : > { %v612_v47 = vadd.f32 %v610_v42, %v607_v44 }
  0xec   : > { %v571_v46 = vpop.permute.xlu1 %570  ;;  %v526_v48 = vpop.permute.xlu0 %525 }
  0xed   : > { %v528_v49 = vadd.f32 %v526_v48, %v521_v45  ;;  %v573_v51 = vadd.f32 %v571_v46, %v566_v38 }
  0xef   : > { %v529_v52 = vmax.f32 %v481_v39, %v528_v49  ;;  %v402_v49 = vmul.f32 %v1105_v13, %v254_v15 }
  0xf0   : > { %v624_v53 = vpop.permute.xlu1 %623  ;;  %v617_v50 = vpop.permute.xlu0 %616 }
  0xf1   : > { %v619_v56 = vadd.f32 %v617_v50, %v612_v47  ;;  %v574_v57 = vmax.f32 %v529_v52, %v573_v51  ;;  %v404_v55 = vrot.slane %v402_v49, 1 }
  0xf3   : > { %v626_v4 = vadd.f32 %v624_v53, %v619_v56 }
  0xf4   : > { %v234_v5 = vpop.permute.xlu1 %233  ;;  %v281_v7 = vpop.permute.xlu0 %280 }
  0xf5   : > { %v236_v25 = vadd.f32 %v234_v5, %v1174_v61  ;;  %v627_v8 = vmax.f32 %v574_v57, %v626_v4  ;;  %v283_v33 = vadd.f32 %v281_v7, %v276_v58  ;;  %v369_v61 = vmul.f32 %v1105_v13, %v1161_v54 }
  0xf6   : > { %v264_v54 = vrot.slane %v1193_v12, 1 }
  0xf7   : > { %v240_v9 = vadd.f32 %v239_v60, %v236_v25  ;;  %v630_v10 = vadd.f32 %v629_v6, %v627_v8 }
  0xf8   : > { %v331_v11 = vpop.permute.xlu1 %330  ;;  %v287_v16 = vpop.permute.xlu0 %286 }
  0xf9   : > { %v333_v17 = vadd.f32 %v331_v11, %v1176_v62  ;;  %v244_v18 = vadd.f32 %v1170_v59, %v240_v9  ;;  %632 = vrot.lane.b32.xlu0 %v630_v10, %s935_s24  ;;  %v289_v20 = vadd.f32 %v287_v16, %v283_v33  ;;  %v351_v59 = vmul.f32 %v1093_v3, %v254_v15 }
  0xfa   : > { %v358_v3 = vrot.slane %v1203_v22, 1  ;;  %v423_v9 = vstv %s422_s29 }
  0xfb   : > { %v338_v21 = vadd.f32 %v336_v29, %v333_v17  ;;  %v291_v24 = vadd.f32 %v290_v14, %v289_v20  ;;  %v353_v40 = vrot.slane %v351_v59, 1 }
  0xfc   : > { %v295_v30 = vpop.permute.xlu1 %294  ;;  %v374_v27 = vpop.permute.xlu0 %373 }
  0xfd   : > { %v343_v28 = vadd.f32 %v341_v19, %v338_v21  ;;  %v376_v62 = vadd.f32 %v374_v27, %v369_v61  ;;  %v297_v37 = vadd.f32 %v295_v30, %v291_v24 }
 0x100   : > { %v250_v2 = vpop.permute.xlu1 %249  ;;  %v380_v35 = vpop.permute.xlu0 %379 }
 0x101   : > { %v252_v36 = vadd.f32 %v250_v2, %v244_v18  ;;  %v382_v1 = vadd.f32 %v380_v35, %v376_v62 }
 0x103   : > { %v259_v38 = vadd.f32 %v257_v31, %v252_v36  ;;  %v387_v42 = vadd.f32 %v385_v32, %v382_v1 }
 0x104   : > { %v348_v41 = vpop.permute.xlu1 %347  ;;  %v301_v44 = vpop.permute.xlu0 %300 }
 0x105   : > { %v350_v45 = vadd.f32 %v348_v41, %v343_v28  ;;  %v266_v46 = vadd.f32 %v264_v54, %v259_v38  ;;  %v303_v47 = vadd.f32 %v301_v44, %v297_v37 }
 0x107   : > { %v355_v48 = vadd.f32 %v353_v40, %v350_v45  ;;  %v308_v0 = vadd.f32 %v306_v43, %v303_v47 }
 0x108   : > { %v313_v39 = vpop.permute.xlu1 %312  ;;  %v392_v12 = vpop.permute.xlu0 %391 }
 0x109   : > { %v360_v51 = vadd.f32 %v358_v3, %v355_v48  ;;  %v394_v52 = vadd.f32 %v392_v12, %v387_v42  ;;  %v315_v56 = vadd.f32 %v313_v39, %v308_v0 }
 0x10c   : > { %v273_v53 = vpop.permute.xlu1 %272  ;;  %v399_v50 = vpop.permute.xlu0 %398 }
 0x10d   : > { %v401_v57 = vadd.f32 %v399_v50, %v394_v52  ;;  %v275_v58 = vadd.f32 %v273_v53, %v266_v46 }
 0x10f   : > { %v406_v63 = vadd.f32 %v404_v55, %v401_v57 }
 0x110   : > { %v365_v60 = vpop.permute.xlu1 %364  ;;  %v320_v22 = vpop.permute.xlu0 %319 }
 0x111   : > { %v322_v4 = vadd.f32 %v320_v22, %v315_v56  ;;  %v367_v5 = vadd.f32 %v365_v60, %v360_v51 }
 0x113   : > { %v323_v6 = vmax.f32 %v275_v58, %v322_v4 }
 0x114   : > { %v411_v13 = vpop.permute.xlu0 %410  ;;  %v418_v7 = vpop.permute.xlu1 %417 }
 0x115   : > { %v368_v25 = vmax.f32 %v323_v6, %v367_v5  ;;  %v413_v8 = vadd.f32 %v411_v13, %v406_v63 }
 0x117   : > { %v420_v33 = vadd.f32 %v418_v7, %v413_v8 }
 0x119   : > { %v421_v29 = vmax.f32 %v368_v25, %v420_v33 }
 0x11b   : > { %v424_v10 = vadd.f32 %v423_v9, %v421_v29 }
 0x11d   : > { %426 = vst.msk [vmem:[%s213_s5] sm:$0x7f] %vm425_vm0, %v424_v10 }
 0x16b   : > { %v633_v11 = vpop.permute.xlu0 %632 }
 0x16c   : > { %636 = vst.msk [vmem:[%s213_s5] sm:$0x7f] %vm635_vm1, %v633_v11 }
 0x16d PF: > { %p15_p11 = scmp.ge.s32.totalorder %s978_s17, 4   ;;  %s1286_s12 = smov %s919_s13 }
 0x16e   : > { %s1287_s13 = smov %s923_s14  ;;  %s1288_s14 = smov %s988_s20 }
 0x16f   : > { %s1289_s15 = smov %s978_s17  ;;  %17 = sbr.rel (!%p15_p11) target bundleno = 5 (0x5), region = 85 }
 0x176   :  { %656 = vsyncpa [#allocation3], 1 }
 0x177   :  { %658 = vsyncpa [#allocation3 + $0x1], 1 }
 0x178   :  { %659 = vsyncpa [#allocation4], 1 }
 0x179   :  { %661 = vsyncpa [#allocation4 + $0x1], 1 }
 0x17a   :  { %662 = vsyncpa [#allocation5], 1 }
 0x17b   :  { %664 = vsyncpa [#allocation5 + $0x1], 1 }

</bundles_post_ra>
